<compile_context>
chip_gen: v6e
topology: v6e:2x2x1
jax: 0.10.0
libtpu: 0.0.40
codegen_flags: <defaults>
</compile_context>

<pallas_src>
import functools

import jax
import jax.numpy as jnp
from jax.experimental import pallas as pl
from jax.experimental.pallas import tpu as pltpu

NUM_LAYERS = 3
NUM_F_MAPS = 32
DIM = 8
NUM_CLASSES = 6
BN_EPS = 1e-5


def mtcb_kernel(x_ref, mask_ref, w_in_ref, w_layers_ref, bias_ref, w_out_ref,
                out_ref, *, num_layers, t_len):
    M, dim = x_ref.shape
    F = w_layers_ref.shape[-1]

    mask = mask_ref[...]                                    # (M, 1) f32
    mask_f = jnp.broadcast_to(mask, (M, F))                 # hoisted lane-broadcast
    # Time index within each sequence (rows are (b, t) flattened); used to zero the
    # rows that the roll wraps across the 2d "memory" left pad / batch boundary.
    t_idx = jax.lax.broadcasted_iota(jnp.int32, (M, 1), 0) % t_len
    inv_n = 1.0 / M

    # Input 1x1 conv: (M, dim) bf16 @ (dim, F) bf16 -> f32 accumulate.
    feat = jnp.dot(x_ref[...], w_in_ref[:dim, :],
                   preferred_element_type=jnp.float32)
    feat = feat + w_in_ref[dim:dim + 1, :].astype(jnp.float32)

    for l in range(num_layers):
        d = 2 ** (num_layers - 1 - l)

        # Dilated conv (kernel=3, dilation=d, 2d zeros of left "memory" padding).
        # Taps are XLU sublane rotates of feat; rows with t < shift are the zero pad.
        tap0 = jnp.where(t_idx < 2 * d, 0.0, pltpu.roll(feat, 2 * d, 0))
        tap1 = jnp.where(t_idx < d, 0.0, pltpu.roll(feat, d, 0))
        taps = jnp.concatenate([tap0, tap1, feat], axis=-1).astype(jnp.bfloat16)

        wl = w_layers_ref[l]                                # (4F, F) bf16: [wd ; w1]
        bl = bias_ref[l]                                    # (4, F) f32: bd,b1,gamma,beta

        # Fused 3-tap dilated conv: one K=3F MXU contraction.
        y = jnp.dot(taps, wl[:3 * F, :],
                    preferred_element_type=jnp.float32) + bl[0:1, :]
        y = jnp.maximum(y, 0.0)                             # ReLU (f32 VPU)

        # 1x1 conv.
        y = jnp.dot(y.astype(jnp.bfloat16), wl[3 * F:, :],
                    preferred_element_type=jnp.float32) + bl[1:2, :]

        # BatchNorm1d, training mode: centered stats over all B*T rows (no
        # E[y^2]-E[y]^2 cancellation), biased variance, affine folded into one FMA.
        mean = jnp.sum(y, axis=0, keepdims=True) * inv_n
        yc = y - mean
        var = jnp.sum(yc * yc, axis=0, keepdims=True) * inv_n
        scale = bl[2:3, :] * jax.lax.rsqrt(var + BN_EPS)    # rsqrt -> EUP slot
        y = yc * scale + bl[3:4, :]

        feat = (feat + y) * mask_f                          # residual + mask

    # Output 1x1 conv, stored at the true class width (no padded HBM writeback).
    out = jnp.dot(feat.astype(jnp.bfloat16), w_out_ref[:F, :],
                  preferred_element_type=jnp.float32)
    out = out + w_out_ref[F:F + 1, :].astype(jnp.float32)
    out_ref[...] = out * mask


def mtcb_forward(x, mask, params):
    B, T, dim = x.shape
    w_in, b_in, wd, bd, w1, b1, gamma, beta, w_out, b_out = params
    L, _, F, _ = wd.shape
    c = w_out.shape[1]
    M = B * T

    # Pack parameters (12 -> 6 kernel inputs: fewer DMA descriptors for a kernel that
    # is launch/DMA-overhead bound at this size) and pre-cast matmul weights to bf16.
    w_in_pk = jnp.concatenate([w_in, b_in], axis=0).astype(jnp.bfloat16)      # (dim+1, F)
    w_layers = jnp.concatenate([wd.reshape(L, 3 * F, F), w1],
                               axis=1).astype(jnp.bfloat16)                   # (L, 4F, F)
    biases = jnp.concatenate([bd, b1, gamma, beta], axis=1)                   # (L, 4, F) f32
    w_out_pk = jnp.concatenate([w_out, b_out], axis=0).astype(jnp.bfloat16)   # (F+1, c)

    # Collapse (B, T) -> M in the wrapper (free layout no-op; T is a multiple of 8).
    x2 = x.reshape(M, dim).astype(jnp.bfloat16)
    mask2 = mask.reshape(M, 1)

    flops = 2 * M * (dim * F + L * (3 * F * F + F * F) + F * c)
    bytes_accessed = (x2.size * 2 + mask2.size * 4 + w_in_pk.size * 2
                      + w_layers.size * 2 + biases.size * 4 + w_out_pk.size * 2
                      + M * c * 4)

    kernel = functools.partial(mtcb_kernel, num_layers=L, t_len=T)
    out2 = pl.pallas_call(
        kernel,
        out_shape=jax.ShapeDtypeStruct((M, c), jnp.float32),
        in_specs=[pl.BlockSpec(memory_space=pltpu.MemorySpace.VMEM)] * 6,
        out_specs=pl.BlockSpec(memory_space=pltpu.MemorySpace.VMEM),
        cost_estimate=pl.CostEstimate(flops=flops, transcendentals=L * F,
                                      bytes_accessed=bytes_accessed),
    )(x2, mask2, w_in_pk, w_layers, biases, w_out_pk)
    return out2.reshape(B, T, c)


def init_params(key):
    """Deterministic synthetic parameters.

    Weight convention: matmul-ready, i.e. (C_in, C_out) — the transpose of PyTorch's
    Conv1d weight[:, :, k]. wd[l, k] corresponds to conv_dilated.weight[:, :, k].T.
    """
    keys = jax.random.split(key, 10)
    s = 0.1
    F, L = NUM_F_MAPS, NUM_LAYERS
    w_in = jax.random.normal(keys[0], (DIM, F), jnp.float32) * s
    b_in = jax.random.normal(keys[1], (1, F), jnp.float32) * s
    wd = jax.random.normal(keys[2], (L, 3, F, F), jnp.float32) * s
    bd = jax.random.normal(keys[3], (L, 1, F), jnp.float32) * s
    w1 = jax.random.normal(keys[4], (L, F, F), jnp.float32) * s
    b1 = jax.random.normal(keys[5], (L, 1, F), jnp.float32) * s
    gamma = 1.0 + jax.random.normal(keys[6], (L, 1, F), jnp.float32) * s
    beta = jax.random.normal(keys[7], (L, 1, F), jnp.float32) * s
    w_out = jax.random.normal(keys[8], (F, NUM_CLASSES), jnp.float32) * s
    b_out = jax.random.normal(keys[9], (1, NUM_CLASSES), jnp.float32) * s
    return (w_in, b_in, wd, bd, w1, b1, gamma, beta, w_out, b_out)


def mtcb_reference(x, mask, params):
    """Pure-JAX f32 reference mirroring the PyTorch forward (same (B,T,C) layout)."""
    w_in, b_in, wd, bd, w1, b1, gamma, beta, w_out, b_out = params
    T = x.shape[1]
    feat = jnp.einsum('btd,df->btf', x, w_in) + b_in[None]
    for l in range(NUM_LAYERS):
        d = 2 ** (NUM_LAYERS - 1 - l)
        padded = jnp.pad(feat, ((0, 0), (2 * d, 0), (0, 0)))
        y = sum(jnp.einsum('btf,fg->btg', padded[:, k * d:k * d + T], wd[l, k])
                for k in range(3)) + bd[l][None]
        y = jnp.maximum(y, 0.0)
        y = jnp.einsum('btf,fg->btg', y, w1[l]) + b1[l][None]
        mean = jnp.mean(y, axis=(0, 1), keepdims=True)
        var = jnp.mean((y - mean) ** 2, axis=(0, 1), keepdims=True)
        y = (y - mean) / jnp.sqrt(var + BN_EPS) * gamma[l][None] + beta[l][None]
        feat = (feat + y) * mask
    out = jnp.einsum('btf,fc->btc', feat, w_out) + b_out[None]
    return out * mask


if __name__ == "__main__":
    key = jax.random.PRNGKey(0)
    kx, km, kp = jax.random.split(key, 3)
    B, T = 2, 16
    x = jax.random.normal(kx, (B, T, DIM), jnp.float32)          # PyTorch x: (B, DIM, T)
    mask = (jax.random.uniform(km, (B, T, 1)) > 0.2).astype(jnp.float32)
    params = init_params(kp)

    out = mtcb_forward(x, mask, params)
    jax.block_until_ready(out)

    ref = mtcb_reference(x, mask, params)
    assert out.shape == (B, T, NUM_CLASSES)
    # bf16 matmul operands (f32 accumulation) vs. f32 reference -> widened tolerance;
    # BN-normalized activations are O(1), so this still catches any structural error.
    max_err = float(jnp.max(jnp.abs(out - ref)))
    assert jnp.allclose(out, ref, atol=5e-2, rtol=5e-2), (
        f"Pallas output != reference (max abs err {max_err})")
    print("KERNEL_OK")
</pallas_src>

<mosaic_0001>
module attributes {stable_mosaic.version = 11 : i64} {
  func.func @mtcb_kernel(%arg0: memref<32x8xbf16, #tpu.memory_space<vmem>>, %arg1: memref<32x1xf32, #tpu.memory_space<vmem>>, %arg2: memref<9x32xbf16, #tpu.memory_space<vmem>>, %arg3: memref<3x128x32xbf16, #tpu.memory_space<vmem>>, %arg4: memref<3x4x32xf32, #tpu.memory_space<vmem>>, %arg5: memref<33x6xbf16, #tpu.memory_space<vmem>>, %arg6: memref<32x6xf32, #tpu.memory_space<vmem>>) attributes {dimension_semantics = [], scalar_prefetch = 0 : i64, scratch_operands = 0 : i64, tpu.core_type = #tpu.core_type<tc>} {
    %c0 = arith.constant 0 : index
    %c0_0 = arith.constant 0 : index
    %0 = vector.load %arg1[%c0, %c0_0] : memref<32x1xf32, #tpu.memory_space<vmem>>, vector<32x1xf32>
    %1 = vector.shape_cast %0 : vector<32x1xf32> to vector<32x1xf32>
    %2 = vector.broadcast %1 : vector<32x1xf32> to vector<32x32xf32>
    %3 = tpu.iota {dimensions = array<i32: 0>} : vector<32x1xi32>
    %c16_i32 = arith.constant 16 : i32
    %c0_i32 = arith.constant 0 : i32
    %4 = arith.cmpi eq, %c16_i32, %c0_i32 : i32
    %c1_i32 = arith.constant 1 : i32
    %5 = arith.select %4, %c1_i32, %c16_i32 : i32
    %6 = vector.broadcast %5 : i32 to vector<32x1xi32>
    %7 = arith.remsi %3, %6 : vector<32x1xi32>
    %c0_i32_1 = arith.constant 0 : i32
    %8 = vector.broadcast %c0_i32_1 : i32 to vector<32x1xi32>
    %9 = arith.cmpi ne, %7, %8 : vector<32x1xi32>
    %c0_i32_2 = arith.constant 0 : i32
    %10 = vector.broadcast %c0_i32_2 : i32 to vector<32x1xi32>
    %11 = arith.cmpi slt, %7, %10 : vector<32x1xi32>
    %c0_i32_3 = arith.constant 0 : i32
    %12 = arith.cmpi slt, %5, %c0_i32_3 : i32
    %13 = vector.broadcast %12 : i1 to vector<32x1xi1>
    %14 = vector.broadcast %13 : vector<32x1xi1> to vector<32x1xi1>
    %15 = arith.xori %11, %14 : vector<32x1xi1>
    %16 = arith.andi %15, %9 : vector<32x1xi1>
    %17 = vector.broadcast %5 : i32 to vector<32x1xi32>
    %18 = arith.addi %7, %17 : vector<32x1xi32>
    %19 = arith.select %16, %18, %7 : vector<32x1xi1>, vector<32x1xi32>
    %c0_4 = arith.constant 0 : index
    %c0_5 = arith.constant 0 : index
    %20 = vector.load %arg0[%c0_4, %c0_5] : memref<32x8xbf16, #tpu.memory_space<vmem>>, vector<32x8xbf16>
    %c0_6 = arith.constant 0 : index
    %c0_7 = arith.constant 0 : index
    %21 = vector.load %arg2[%c0_6, %c0_7] : memref<9x32xbf16, #tpu.memory_space<vmem>>, vector<8x32xbf16>
    %cst = arith.constant dense<0.000000e+00> : vector<32x32xf32>
    %22 = tpu.matmul %20, %21, %cst {dimension_numbers = #tpu.dot_dimension_numbers<[1], [0], [0], [1], [0, 0, 1, 1], [], []>} : vector<32x8xbf16>, vector<8x32xbf16>, vector<32x32xf32> -> vector<32x32xf32>
    %c8 = arith.constant 8 : index
    %c0_8 = arith.constant 0 : index
    %23 = vector.load %arg2[%c8, %c0_8] : memref<9x32xbf16, #tpu.memory_space<vmem>>, vector<1x32xbf16>
    %24 = arith.extf %23 : vector<1x32xbf16> to vector<1x32xf32>
    %25 = vector.broadcast %24 : vector<1x32xf32> to vector<32x32xf32>
    %26 = arith.addf %22, %25 : vector<32x32xf32>
    %c8_i32 = arith.constant 8 : i32
    %27 = vector.broadcast %c8_i32 : i32 to vector<32x1xi32>
    %28 = arith.cmpi slt, %19, %27 : vector<32x1xi32>
    %c8_i32_9 = arith.constant 8 : i32
    %29 = tpu.dynamic_rotate %26 by %c8_i32_9 dim 0 : vector<32x32xf32>, i32 -> vector<32x32xf32>
    %cst_10 = arith.constant 0.000000e+00 : f32
    %30 = vector.shape_cast %28 : vector<32x1xi1> to vector<32x1xi1>
    %31 = vector.broadcast %30 : vector<32x1xi1> to vector<32x32xi1>
    %32 = vector.broadcast %cst_10 : f32 to vector<32x32xf32>
    %33 = arith.select %31, %32, %29 : vector<32x32xi1>, vector<32x32xf32>
    %c4_i32 = arith.constant 4 : i32
    %34 = vector.broadcast %c4_i32 : i32 to vector<32x1xi32>
    %35 = arith.cmpi slt, %19, %34 : vector<32x1xi32>
    %c4_i32_11 = arith.constant 4 : i32
    %36 = tpu.dynamic_rotate %26 by %c4_i32_11 dim 0 : vector<32x32xf32>, i32 -> vector<32x32xf32>
    %cst_12 = arith.constant 0.000000e+00 : f32
    %37 = vector.shape_cast %35 : vector<32x1xi1> to vector<32x1xi1>
    %38 = vector.broadcast %37 : vector<32x1xi1> to vector<32x32xi1>
    %39 = vector.broadcast %cst_12 : f32 to vector<32x32xf32>
    %40 = arith.select %38, %39, %36 : vector<32x32xi1>, vector<32x32xf32>
    %41 = tpu.concatenate %33, %40, %26 in 1 : vector<32x32xf32>, vector<32x32xf32>, vector<32x32xf32> -> vector<32x96xf32>
    %42 = arith.truncf %41 : vector<32x96xf32> to vector<32x96xbf16>
    %c0_13 = arith.constant 0 : index
    %c0_14 = arith.constant 0 : index
    %c0_15 = arith.constant 0 : index
    %43 = vector.load %arg3[%c0_13, %c0_14, %c0_15] : memref<3x128x32xbf16, #tpu.memory_space<vmem>>, vector<1x128x32xbf16>
    %44 = vector.shape_cast %43 : vector<1x128x32xbf16> to vector<128x32xbf16>
    %c0_16 = arith.constant 0 : index
    %c0_17 = arith.constant 0 : index
    %c0_18 = arith.constant 0 : index
    %45 = vector.load %arg4[%c0_16, %c0_17, %c0_18] : memref<3x4x32xf32, #tpu.memory_space<vmem>>, vector<1x4x32xf32>
    %46 = vector.shape_cast %45 : vector<1x4x32xf32> to vector<4x32xf32>
    %47 = vector.extract_strided_slice %44 {offsets = [0, 0], sizes = [96, 32], strides = [1, 1]} : vector<128x32xbf16> to vector<96x32xbf16>
    %cst_19 = arith.constant dense<0.000000e+00> : vector<32x32xf32>
    %48 = tpu.matmul %42, %47, %cst_19 {dimension_numbers = #tpu.dot_dimension_numbers<[1], [0], [0], [1], [0, 0, 1, 1], [], []>} : vector<32x96xbf16>, vector<96x32xbf16>, vector<32x32xf32> -> vector<32x32xf32>
    %49 = vector.extract_strided_slice %46 {offsets = [0, 0], sizes = [1, 32], strides = [1, 1]} : vector<4x32xf32> to vector<1x32xf32>
    %50 = vector.broadcast %49 : vector<1x32xf32> to vector<32x32xf32>
    %51 = arith.addf %48, %50 : vector<32x32xf32>
    %cst_20 = arith.constant 0.000000e+00 : f32
    %52 = vector.broadcast %cst_20 : f32 to vector<32x32xf32>
    %53 = arith.maximumf %51, %52 : vector<32x32xf32>
    %54 = arith.truncf %53 : vector<32x32xf32> to vector<32x32xbf16>
    %55 = vector.extract_strided_slice %44 {offsets = [96, 0], sizes = [32, 32], strides = [1, 1]} : vector<128x32xbf16> to vector<32x32xbf16>
    %cst_21 = arith.constant dense<0.000000e+00> : vector<32x32xf32>
    %56 = tpu.matmul %54, %55, %cst_21 {dimension_numbers = #tpu.dot_dimension_numbers<[1], [0], [0], [1], [0, 0, 1, 1], [], []>} : vector<32x32xbf16>, vector<32x32xbf16>, vector<32x32xf32> -> vector<32x32xf32>
    %57 = vector.extract_strided_slice %46 {offsets = [1, 0], sizes = [1, 32], strides = [1, 1]} : vector<4x32xf32> to vector<1x32xf32>
    %58 = vector.broadcast %57 : vector<1x32xf32> to vector<32x32xf32>
    %59 = arith.addf %56, %58 : vector<32x32xf32>
    %cst_22 = arith.constant dense<0.000000e+00> : vector<32xf32>
    %60 = vector.multi_reduction <add>, %59, %cst_22 [0] : vector<32x32xf32> to vector<32xf32>
    %61 = vector.shape_cast %60 : vector<32xf32> to vector<1x32xf32>
    %cst_23 = arith.constant 3.125000e-02 : f32
    %62 = vector.broadcast %cst_23 : f32 to vector<1x32xf32>
    %63 = arith.mulf %61, %62 : vector<1x32xf32>
    %64 = vector.broadcast %63 : vector<1x32xf32> to vector<32x32xf32>
    %65 = arith.subf %59, %64 : vector<32x32xf32>
    %66 = arith.mulf %65, %65 : vector<32x32xf32>
    %cst_24 = arith.constant dense<0.000000e+00> : vector<32xf32>
    %67 = vector.multi_reduction <add>, %66, %cst_24 [0] : vector<32x32xf32> to vector<32xf32>
    %68 = vector.shape_cast %67 : vector<32xf32> to vector<1x32xf32>
    %cst_25 = arith.constant 3.125000e-02 : f32
    %69 = vector.broadcast %cst_25 : f32 to vector<1x32xf32>
    %70 = arith.mulf %68, %69 : vector<1x32xf32>
    %71 = vector.extract_strided_slice %46 {offsets = [2, 0], sizes = [1, 32], strides = [1, 1]} : vector<4x32xf32> to vector<1x32xf32>
    %cst_26 = arith.constant 9.99999974E-6 : f32
    %72 = vector.broadcast %cst_26 : f32 to vector<1x32xf32>
    %73 = arith.addf %70, %72 : vector<1x32xf32>
    %74 = math.rsqrt %73 : vector<1x32xf32>
    %75 = arith.mulf %71, %74 : vector<1x32xf32>
    %76 = vector.broadcast %75 : vector<1x32xf32> to vector<32x32xf32>
    %77 = arith.mulf %65, %76 : vector<32x32xf32>
    %78 = vector.extract_strided_slice %46 {offsets = [3, 0], sizes = [1, 32], strides = [1, 1]} : vector<4x32xf32> to vector<1x32xf32>
    %79 = vector.broadcast %78 : vector<1x32xf32> to vector<32x32xf32>
    %80 = arith.addf %77, %79 : vector<32x32xf32>
    %81 = arith.addf %26, %80 : vector<32x32xf32>
    %82 = arith.mulf %81, %2 : vector<32x32xf32>
    %c4_i32_27 = arith.constant 4 : i32
    %83 = vector.broadcast %c4_i32_27 : i32 to vector<32x1xi32>
    %84 = arith.cmpi slt, %19, %83 : vector<32x1xi32>
    %c4_i32_28 = arith.constant 4 : i32
    %85 = tpu.dynamic_rotate %82 by %c4_i32_28 dim 0 : vector<32x32xf32>, i32 -> vector<32x32xf32>
    %cst_29 = arith.constant 0.000000e+00 : f32
    %86 = vector.shape_cast %84 : vector<32x1xi1> to vector<32x1xi1>
    %87 = vector.broadcast %86 : vector<32x1xi1> to vector<32x32xi1>
    %88 = vector.broadcast %cst_29 : f32 to vector<32x32xf32>
    %89 = arith.select %87, %88, %85 : vector<32x32xi1>, vector<32x32xf32>
    %c2_i32 = arith.constant 2 : i32
    %90 = vector.broadcast %c2_i32 : i32 to vector<32x1xi32>
    %91 = arith.cmpi slt, %19, %90 : vector<32x1xi32>
    %c2_i32_30 = arith.constant 2 : i32
    %92 = tpu.dynamic_rotate %82 by %c2_i32_30 dim 0 : vector<32x32xf32>, i32 -> vector<32x32xf32>
    %cst_31 = arith.constant 0.000000e+00 : f32
    %93 = vector.shape_cast %91 : vector<32x1xi1> to vector<32x1xi1>
    %94 = vector.broadcast %93 : vector<32x1xi1> to vector<32x32xi1>
    %95 = vector.broadcast %cst_31 : f32 to vector<32x32xf32>
    %96 = arith.select %94, %95, %92 : vector<32x32xi1>, vector<32x32xf32>
    %97 = tpu.concatenate %89, %96, %82 in 1 : vector<32x32xf32>, vector<32x32xf32>, vector<32x32xf32> -> vector<32x96xf32>
    %98 = arith.truncf %97 : vector<32x96xf32> to vector<32x96xbf16>
    %c1 = arith.constant 1 : index
    %c0_32 = arith.constant 0 : index
    %c0_33 = arith.constant 0 : index
    %99 = vector.load %arg3[%c1, %c0_32, %c0_33] : memref<3x128x32xbf16, #tpu.memory_space<vmem>>, vector<1x128x32xbf16>
    %100 = vector.shape_cast %99 : vector<1x128x32xbf16> to vector<128x32xbf16>
    %c1_34 = arith.constant 1 : index
    %c0_35 = arith.constant 0 : index
    %c0_36 = arith.constant 0 : index
    %101 = vector.load %arg4[%c1_34, %c0_35, %c0_36] : memref<3x4x32xf32, #tpu.memory_space<vmem>>, vector<1x4x32xf32>
    %102 = vector.shape_cast %101 : vector<1x4x32xf32> to vector<4x32xf32>
    %103 = vector.extract_strided_slice %100 {offsets = [0, 0], sizes = [96, 32], strides = [1, 1]} : vector<128x32xbf16> to vector<96x32xbf16>
    %cst_37 = arith.constant dense<0.000000e+00> : vector<32x32xf32>
    %104 = tpu.matmul %98, %103, %cst_37 {dimension_numbers = #tpu.dot_dimension_numbers<[1], [0], [0], [1], [0, 0, 1, 1], [], []>} : vector<32x96xbf16>, vector<96x32xbf16>, vector<32x32xf32> -> vector<32x32xf32>
    %105 = vector.extract_strided_slice %102 {offsets = [0, 0], sizes = [1, 32], strides = [1, 1]} : vector<4x32xf32> to vector<1x32xf32>
    %106 = vector.broadcast %105 : vector<1x32xf32> to vector<32x32xf32>
    %107 = arith.addf %104, %106 : vector<32x32xf32>
    %cst_38 = arith.constant 0.000000e+00 : f32
    %108 = vector.broadcast %cst_38 : f32 to vector<32x32xf32>
    %109 = arith.maximumf %107, %108 : vector<32x32xf32>
    %110 = arith.truncf %109 : vector<32x32xf32> to vector<32x32xbf16>
    %111 = vector.extract_strided_slice %100 {offsets = [96, 0], sizes = [32, 32], strides = [1, 1]} : vector<128x32xbf16> to vector<32x32xbf16>
    %cst_39 = arith.constant dense<0.000000e+00> : vector<32x32xf32>
    %112 = tpu.matmul %110, %111, %cst_39 {dimension_numbers = #tpu.dot_dimension_numbers<[1], [0], [0], [1], [0, 0, 1, 1], [], []>} : vector<32x32xbf16>, vector<32x32xbf16>, vector<32x32xf32> -> vector<32x32xf32>
    %113 = vector.extract_strided_slice %102 {offsets = [1, 0], sizes = [1, 32], strides = [1, 1]} : vector<4x32xf32> to vector<1x32xf32>
    %114 = vector.broadcast %113 : vector<1x32xf32> to vector<32x32xf32>
    %115 = arith.addf %112, %114 : vector<32x32xf32>
    %cst_40 = arith.constant dense<0.000000e+00> : vector<32xf32>
    %116 = vector.multi_reduction <add>, %115, %cst_40 [0] : vector<32x32xf32> to vector<32xf32>
    %117 = vector.shape_cast %116 : vector<32xf32> to vector<1x32xf32>
    %cst_41 = arith.constant 3.125000e-02 : f32
    %118 = vector.broadcast %cst_41 : f32 to vector<1x32xf32>
    %119 = arith.mulf %117, %118 : vector<1x32xf32>
    %120 = vector.broadcast %119 : vector<1x32xf32> to vector<32x32xf32>
    %121 = arith.subf %115, %120 : vector<32x32xf32>
    %122 = arith.mulf %121, %121 : vector<32x32xf32>
    %cst_42 = arith.constant dense<0.000000e+00> : vector<32xf32>
    %123 = vector.multi_reduction <add>, %122, %cst_42 [0] : vector<32x32xf32> to vector<32xf32>
    %124 = vector.shape_cast %123 : vector<32xf32> to vector<1x32xf32>
    %cst_43 = arith.constant 3.125000e-02 : f32
    %125 = vector.broadcast %cst_43 : f32 to vector<1x32xf32>
    %126 = arith.mulf %124, %125 : vector<1x32xf32>
    %127 = vector.extract_strided_slice %102 {offsets = [2, 0], sizes = [1, 32], strides = [1, 1]} : vector<4x32xf32> to vector<1x32xf32>
    %cst_44 = arith.constant 9.99999974E-6 : f32
    %128 = vector.broadcast %cst_44 : f32 to vector<1x32xf32>
    %129 = arith.addf %126, %128 : vector<1x32xf32>
    %130 = math.rsqrt %129 : vector<1x32xf32>
    %131 = arith.mulf %127, %130 : vector<1x32xf32>
    %132 = vector.broadcast %131 : vector<1x32xf32> to vector<32x32xf32>
    %133 = arith.mulf %121, %132 : vector<32x32xf32>
    %134 = vector.extract_strided_slice %102 {offsets = [3, 0], sizes = [1, 32], strides = [1, 1]} : vector<4x32xf32> to vector<1x32xf32>
    %135 = vector.broadcast %134 : vector<1x32xf32> to vector<32x32xf32>
    %136 = arith.addf %133, %135 : vector<32x32xf32>
    %137 = arith.addf %82, %136 : vector<32x32xf32>
    %138 = arith.mulf %137, %2 : vector<32x32xf32>
    %c2_i32_45 = arith.constant 2 : i32
    %139 = vector.broadcast %c2_i32_45 : i32 to vector<32x1xi32>
    %140 = arith.cmpi slt, %19, %139 : vector<32x1xi32>
    %c2_i32_46 = arith.constant 2 : i32
    %141 = tpu.dynamic_rotate %138 by %c2_i32_46 dim 0 : vector<32x32xf32>, i32 -> vector<32x32xf32>
    %cst_47 = arith.constant 0.000000e+00 : f32
    %142 = vector.shape_cast %140 : vector<32x1xi1> to vector<32x1xi1>
    %143 = vector.broadcast %142 : vector<32x1xi1> to vector<32x32xi1>
    %144 = vector.broadcast %cst_47 : f32 to vector<32x32xf32>
    %145 = arith.select %143, %144, %141 : vector<32x32xi1>, vector<32x32xf32>
    %c1_i32_48 = arith.constant 1 : i32
    %146 = vector.broadcast %c1_i32_48 : i32 to vector<32x1xi32>
    %147 = arith.cmpi slt, %19, %146 : vector<32x1xi32>
    %c1_i32_49 = arith.constant 1 : i32
    %148 = tpu.dynamic_rotate %138 by %c1_i32_49 dim 0 : vector<32x32xf32>, i32 -> vector<32x32xf32>
    %cst_50 = arith.constant 0.000000e+00 : f32
    %149 = vector.shape_cast %147 : vector<32x1xi1> to vector<32x1xi1>
    %150 = vector.broadcast %149 : vector<32x1xi1> to vector<32x32xi1>
    %151 = vector.broadcast %cst_50 : f32 to vector<32x32xf32>
    %152 = arith.select %150, %151, %148 : vector<32x32xi1>, vector<32x32xf32>
    %153 = tpu.concatenate %145, %152, %138 in 1 : vector<32x32xf32>, vector<32x32xf32>, vector<32x32xf32> -> vector<32x96xf32>
    %154 = arith.truncf %153 : vector<32x96xf32> to vector<32x96xbf16>
    %c2 = arith.constant 2 : index
    %c0_51 = arith.constant 0 : index
    %c0_52 = arith.constant 0 : index
    %155 = vector.load %arg3[%c2, %c0_51, %c0_52] : memref<3x128x32xbf16, #tpu.memory_space<vmem>>, vector<1x128x32xbf16>
    %156 = vector.shape_cast %155 : vector<1x128x32xbf16> to vector<128x32xbf16>
    %c2_53 = arith.constant 2 : index
    %c0_54 = arith.constant 0 : index
    %c0_55 = arith.constant 0 : index
    %157 = vector.load %arg4[%c2_53, %c0_54, %c0_55] : memref<3x4x32xf32, #tpu.memory_space<vmem>>, vector<1x4x32xf32>
    %158 = vector.shape_cast %157 : vector<1x4x32xf32> to vector<4x32xf32>
    %159 = vector.extract_strided_slice %156 {offsets = [0, 0], sizes = [96, 32], strides = [1, 1]} : vector<128x32xbf16> to vector<96x32xbf16>
    %cst_56 = arith.constant dense<0.000000e+00> : vector<32x32xf32>
    %160 = tpu.matmul %154, %159, %cst_56 {dimension_numbers = #tpu.dot_dimension_numbers<[1], [0], [0], [1], [0, 0, 1, 1], [], []>} : vector<32x96xbf16>, vector<96x32xbf16>, vector<32x32xf32> -> vector<32x32xf32>
    %161 = vector.extract_strided_slice %158 {offsets = [0, 0], sizes = [1, 32], strides = [1, 1]} : vector<4x32xf32> to vector<1x32xf32>
    %162 = vector.broadcast %161 : vector<1x32xf32> to vector<32x32xf32>
    %163 = arith.addf %160, %162 : vector<32x32xf32>
    %cst_57 = arith.constant 0.000000e+00 : f32
    %164 = vector.broadcast %cst_57 : f32 to vector<32x32xf32>
    %165 = arith.maximumf %163, %164 : vector<32x32xf32>
    %166 = arith.truncf %165 : vector<32x32xf32> to vector<32x32xbf16>
    %167 = vector.extract_strided_slice %156 {offsets = [96, 0], sizes = [32, 32], strides = [1, 1]} : vector<128x32xbf16> to vector<32x32xbf16>
    %cst_58 = arith.constant dense<0.000000e+00> : vector<32x32xf32>
    %168 = tpu.matmul %166, %167, %cst_58 {dimension_numbers = #tpu.dot_dimension_numbers<[1], [0], [0], [1], [0, 0, 1, 1], [], []>} : vector<32x32xbf16>, vector<32x32xbf16>, vector<32x32xf32> -> vector<32x32xf32>
    %169 = vector.extract_strided_slice %158 {offsets = [1, 0], sizes = [1, 32], strides = [1, 1]} : vector<4x32xf32> to vector<1x32xf32>
    %170 = vector.broadcast %169 : vector<1x32xf32> to vector<32x32xf32>
    %171 = arith.addf %168, %170 : vector<32x32xf32>
    %cst_59 = arith.constant dense<0.000000e+00> : vector<32xf32>
    %172 = vector.multi_reduction <add>, %171, %cst_59 [0] : vector<32x32xf32> to vector<32xf32>
    %173 = vector.shape_cast %172 : vector<32xf32> to vector<1x32xf32>
    %cst_60 = arith.constant 3.125000e-02 : f32
    %174 = vector.broadcast %cst_60 : f32 to vector<1x32xf32>
    %175 = arith.mulf %173, %174 : vector<1x32xf32>
    %176 = vector.broadcast %175 : vector<1x32xf32> to vector<32x32xf32>
    %177 = arith.subf %171, %176 : vector<32x32xf32>
    %178 = arith.mulf %177, %177 : vector<32x32xf32>
    %cst_61 = arith.constant dense<0.000000e+00> : vector<32xf32>
    %179 = vector.multi_reduction <add>, %178, %cst_61 [0] : vector<32x32xf32> to vector<32xf32>
    %180 = vector.shape_cast %179 : vector<32xf32> to vector<1x32xf32>
    %cst_62 = arith.constant 3.125000e-02 : f32
    %181 = vector.broadcast %cst_62 : f32 to vector<1x32xf32>
    %182 = arith.mulf %180, %181 : vector<1x32xf32>
    %183 = vector.extract_strided_slice %158 {offsets = [2, 0], sizes = [1, 32], strides = [1, 1]} : vector<4x32xf32> to vector<1x32xf32>
    %cst_63 = arith.constant 9.99999974E-6 : f32
    %184 = vector.broadcast %cst_63 : f32 to vector<1x32xf32>
    %185 = arith.addf %182, %184 : vector<1x32xf32>
    %186 = math.rsqrt %185 : vector<1x32xf32>
    %187 = arith.mulf %183, %186 : vector<1x32xf32>
    %188 = vector.broadcast %187 : vector<1x32xf32> to vector<32x32xf32>
    %189 = arith.mulf %177, %188 : vector<32x32xf32>
    %190 = vector.extract_strided_slice %158 {offsets = [3, 0], sizes = [1, 32], strides = [1, 1]} : vector<4x32xf32> to vector<1x32xf32>
    %191 = vector.broadcast %190 : vector<1x32xf32> to vector<32x32xf32>
    %192 = arith.addf %189, %191 : vector<32x32xf32>
    %193 = arith.addf %138, %192 : vector<32x32xf32>
    %194 = arith.mulf %193, %2 : vector<32x32xf32>
    %195 = arith.truncf %194 : vector<32x32xf32> to vector<32x32xbf16>
    %c0_64 = arith.constant 0 : index
    %c0_65 = arith.constant 0 : index
    %196 = vector.load %arg5[%c0_64, %c0_65] : memref<33x6xbf16, #tpu.memory_space<vmem>>, vector<32x6xbf16>
    %cst_66 = arith.constant dense<0.000000e+00> : vector<32x6xf32>
    %197 = tpu.matmul %195, %196, %cst_66 {dimension_numbers = #tpu.dot_dimension_numbers<[1], [0], [0], [1], [0, 0, 1, 1], [], []>} : vector<32x32xbf16>, vector<32x6xbf16>, vector<32x6xf32> -> vector<32x6xf32>
    %c32 = arith.constant 32 : index
    %c0_67 = arith.constant 0 : index
    %198 = vector.load %arg5[%c32, %c0_67] : memref<33x6xbf16, #tpu.memory_space<vmem>>, vector<1x6xbf16>
    %199 = arith.extf %198 : vector<1x6xbf16> to vector<1x6xf32>
    %200 = vector.broadcast %199 : vector<1x6xf32> to vector<32x6xf32>
    %201 = arith.addf %197, %200 : vector<32x6xf32>
    %202 = vector.broadcast %0 : vector<32x1xf32> to vector<32x6xf32>
    %203 = arith.mulf %201, %202 : vector<32x6xf32>
    %c0_68 = arith.constant 0 : index
    %c0_69 = arith.constant 0 : index
    %204 = vector.load %arg6[%c0_68, %c0_69] : memref<32x6xf32, #tpu.memory_space<vmem>>, vector<32x6xf32>
    tpu.vector_store %arg6[%c0_68, %c0_69], %203 {strides = array<i32>} : memref<32x6xf32, #tpu.memory_space<vmem>>, vector<32x6xf32>,
    return
  }
}

</mosaic_0001>

<bundles_post_ra>
// kernel: tpu_custom_call.1
= control target key start
LH: loop header
LB: loop body
LE: loop exit
PB: predicated region body
PF: predicated region fallthrough
CT: control target
= control target key end

     0   :  { %vm129_vm0 = vcmask 1043456   ;;  %vm122_vm1 = vcmask 64512   ;;  %v48_v7 = vlaneseq  ;;  %s1585_s15 = smov 64   ;;  %s1586_s16 = smov 32   ;;  %vm255_vm5 = vcmask 261120   ;;  %s2026_s2 = inlined_call_operand.vmem [shape: bf16[9,32], index: 2, kind: input, shape index: {}]   ;;  %s2027_s0 = inlined_call_operand.vmem [shape: bf16[32,8], index: 0, kind: input, shape index: {}]   ;;  %s2028_s3 = inlined_call_operand.vmem [shape: bf16[3,128,32], index: 3, kind: input, shape index: {}]   ;;  %s2029_s1 = inlined_call_operand.vmem [shape: f32[32,1], index: 1, kind: input, shape index: {}]   ;;  %s2030_s4 = inlined_call_operand.vmem [shape: f32[3,4,32], index: 4, kind: input, shape index: {}]   ;;  %s2031_s5 = inlined_call_operand.vmem [shape: bf16[33,6], index: 5, kind: input, shape index: {}]   ;;  %s2032_s6 = inlined_call_operand.vmem [shape: f32[32,6], index: 6, kind: output, shape index: {}]  }
   0x1   :  { %v105_v0 = vld [vmem:[%s2026_s2] sm:$0xf]  ;;  %v1552_v3 = vld [vmem:[%s2027_s0 + $0x8] sm:$0xff]   ;;  %v1555_v6 = vld [vmem:[%s2028_s3 + $0x18] sm:$0xff]   ;;  %vm260_vm6 = vcmask 523264   ;;  %vm324_vm7 = vcmask 785408  }
   0x2   :  { %1485 = vmatprep.subr.msk.bf16.mxu0 %vm129_vm0, %v105_v0  ;;  %v131_v1 = vsel %vm129_vm0, %v105_v0, 0  ;;  %v1551_v2 = vld [vmem:[%s2027_s0] sm:$0xff]   ;;  %v1553_v4 = vld [vmem:[%s2028_s3 + $0x28] sm:$0xff]   ;;  %v1641_v8 = vshrl.u32 %v48_v7, 7  ;;  %v1556_v12 = vld [vmem:[%s2028_s3 + $0x10] sm:$0xff]   ;;  %vm1269_vm14 = vcmask 48128  }
   0x3   :  { %1400 = vmatpush3.bf16.msra.mxu0 %v131_v1  ;;  %1401 = vmatprep.mubr.msk.bf16.mxu0 %vm122_vm1, %v1551_v2  ;;  %v1554_v5 = vld [vmem:[%s2028_s3 + $0x20] sm:$0xff]   ;;  %v1557_v15 = vld [vmem:[%s2028_s3 + $0x8] sm:$0xff]   ;;  %v1559_v63 = vld [vmem:[%s2028_s3 + $0x38] sm:$0xff]   ;;  %v1587_v1 = vmov 0  }
   0x4   :  { %1405 = vmatprep.subr.bf16.mxu1 %v1553_v4  ;;  %v106_v9 = vld [vmem:[%s2026_s2 + $0x4] sm:$0x1]  ;;  %v1647_v11 = vsub.s32 0, %v1641_v8  ;;  %v51_v17 = vadd.s32 16, %v1641_v8  ;;  %v1660_v19 = vand.u32 15, %v1641_v8  ;;  %vm206_vm2 = vcmp.lt.s32.totalorder %v1641_v8, 4  ;;  %1421 = vmatprep.subr.bf16.mxu0 %v1559_v63 }
   0x5   :  { %1406 = vmatpush3.bf16.msra.mxu1 %v1553_v4  ;;  %v107_v10 = vunpack.c.l.bf16 %v106_v9  ;;  %v1558_v23 = vld [vmem:[%s2028_s3] sm:$0xff]   ;;  %v1560_v0 = vld [vmem:[%s2028_s3 + $0x30] sm:$0xff]   ;;  %1510 = vset.pattern.permute.xlu1 %v1587_v1  ;;  %v27_v2 = vld [vmem:[%s2029_s1 + $0x18] sm:$0xff]  ;;  %vm540_vm8 = vcmp.lt.s32.totalorder %v1641_v8, 2  ;;  %vm873_vm12 = vcmp.lt.s32.totalorder %v1641_v8, 1 }
   0x6   :  { %1402 = vmatmul.mubr.msk.bf16.vlgmr.msra.gmra.mxu0 %vm122_vm1, %v1552_v3  ;;  %1407 = vmatprep.subr.bf16.mxu1 %v1554_v5  ;;  %v1670_v25 = vand.u32 15, %v51_v17  ;;  %vm198_vm3 = vcmp.lt.s32.totalorder %v1660_v19, 4  ;;  %v24_v3 = vld [vmem:[%s2029_s1] sm:$0xff]  ;;  %v25_v4 = vld [vmem:[%s2029_s1 + $0x8] sm:$0xff]  ;;  %vm532_vm10 = vcmp.lt.s32.totalorder %v1660_v19, 2  ;;  %vm865_vm13 = vcmp.lt.s32.totalorder %v1660_v19, 1 }
   0x7   :  { %v111_v14 = vrot.slane %v107_v10, %v1647_v11  ;;  %1422 = vmatpush3.bf16.msra.mxu0 %v1559_v63  ;;  %1509 = vset.pattern.permute.xlu0 %v1587_v1 }
   0x8   :  { %vm200_vm4 = vcmp.lt.s32.totalorder %v1670_v25, 4  ;;  %1423 = vmatprep.subr.bf16.mxu0 %v1560_v0  ;;  %vm534_vm9 = vcmp.lt.s32.totalorder %v1670_v25, 2  ;;  %vm867_vm11 = vcmp.lt.s32.totalorder %v1670_v25, 1 }
   0x9   :  { %1408 = vmatpush3.bf16.msra.mxu1 %v1554_v5  ;;  %v26_v5 = vld [vmem:[%s2029_s1 + $0x10] sm:$0xff] }
   0xa   :  { %1409 = vmatprep.subr.bf16.mxu1 %v1555_v6 }
   0xb   :  { %1424 = vmatpush3.bf16.msra.mxu0 %v1560_v0 }
   0xd   :  { %1410 = vmatpush3.bf16.msra.mxu1 %v1555_v6  ;;  %v1733_v6 = vld [vmem:[%s2030_s4] sm:$0xf] }
   0xe   :  { %1411 = vmatprep.subr.bf16.mxu1 %v1556_v12  ;;  %v287_v9 = vrot.slane %v1733_v6, %v1647_v11 }
  0x11   :  { %1412 = vmatpush3.bf16.msra.mxu1 %v1556_v12 }
  0x12   :  { %1413 = vmatprep.subr.bf16.mxu1 %v1557_v15 }
  0x15   :  { %1414 = vmatpush3.bf16.msra.mxu1 %v1557_v15 }
  0x16   :  { %1415 = vmatprep.subr.bf16.mxu1 %v1558_v23 }
  0x19   :  { %1416 = vmatpush3.bf16.msra.mxu1 %v1558_v23 }
  0xc6   :  { %v1403_v13 = vpop.f32.mrf.mxu0 }
  0xc7   :  { %v1662_v21 = vadd.f32 %v1403_v13, %v111_v14 }
  0xc8   :  { %v167_v16 = vpop.f32.mrf.mxu0 }
  0xc9   :  { %v1657_v18 = vadd.f32 %v167_v16, %v111_v14  ;;  %v204_v29 = vrot.slane %v1662_v21, 4 }
  0xca   :  { %v1404_v20 = vpop.f32.mrf.mxu0 }
  0xcb   :  { %v1664_v22 = vadd.f32 %v1404_v20, %v111_v14  ;;  %v202_v28 = vrot.slane %v1657_v18, 4 }
  0xcc   :  { %v170_v24 = vpop.f32.mrf.mxu0 }
  0xcd   :  { %v205_v26 = vrot.slane %v1664_v22, 4  ;;  %v1673_v27 = vadd.f32 %v170_v24, %v111_v14  ;;  %v1504_v37 = vpack.i.bf16 %v1664_v22, %v1662_v21 }
  0xcf   :  { %v203_v30 = vrot.slane %v1673_v27, 4  ;;  %v1499_v31 = vpack.i.bf16 %v1673_v27, %v1657_v18  ;;  %v210_v32 = vsel %vm206_vm2, %v205_v26, %v202_v28  ;;  %v207_v39 = vsel %vm206_vm2, %v204_v29, %v205_v26 }
  0xd0   :  { %v219_v33 = vsel %vm198_vm3, 0.0, %v210_v32  ;;  %v1563_v32 = vld [vmem:[%s2028_s3 + $0x58] sm:$0xff]  }
  0xd1   :  { %1500 = vrot.lane.b32.xlu1 %v1499_v31, %s1585_s15  ;;  %v209_v34 = vsel %vm206_vm2, %v202_v28, %v203_v30  ;;  %v208_v35 = vsel %vm206_vm2, %v203_v30, %v204_v29  ;;  %v1561_v30 = vld [vmem:[%s2028_s3 + $0x68] sm:$0xff]   ;;  %v1562_v31 = vld [vmem:[%s2028_s3 + $0x60] sm:$0xff]  }
  0xd2   :  { %v1489_v36 = vpack.i.bf16 %v209_v34, %v219_v33  ;;  %v221_v38 = vsel %vm200_vm4, 0.0, %v208_v35  ;;  %1429 = vmatprep.subr.bf16.mxu0 %v1561_v30  ;;  %v1564_v33 = vld [vmem:[%s2028_s3 + $0x50] sm:$0xff]   ;;  %v1752_v34 = vsub.s32 1, %v1641_v8 }
  0xd3   :  { %v1494_v40 = vpack.i.bf16 %v207_v39, %v221_v38 }
  0xd4   :  { %1490 = vrot.lane.b32.xlu0 %v1489_v36, %s1586_s16 }
  0xd5   :  { %1505 = vrot.lane.b32.xlu1 %v1504_v37, %s1585_s15  ;;  %v389_v37 = vrot.slane %v1733_v6, %v1752_v34 }
  0xd8   :  { %1495 = vrot.lane.b32.xlu0 %v1494_v40, %s1586_s16 }
  0xd9   :  { %45 = vperm.xlu1 %1510, %v27_v2  }
  0xdc   :  { %30 = vperm.xlu0 %1509, %v24_v3  }
  0xdd   :  { %35 = vperm.xlu1 %1510, %v25_v4  }
  0xe0   :  { %40 = vperm.xlu0 %1509, %v26_v5  }
 0x143   :  { %v1501_v41 = vpop.permute.xlu1 %1500 }
 0x144   :  { %v1503_v45 = vunpack.i.h.bf16 %v1501_v41  ;;  %v1502_v46 = vunpack.i.l.bf16 %v1501_v41 }
 0x146   :  { %v1491_v42 = vpop.permute.xlu0 %1490 }
 0x147   :  { %v1493_v43 = vunpack.i.h.bf16 %v1491_v42  ;;  %v1492_v44 = vunpack.i.l.bf16 %v1491_v42  ;;  %v1506_v48 = vpop.permute.xlu1 %1505 }
 0x148   :  { %v1508_v56 = vunpack.i.h.bf16 %v1506_v48  ;;  %v1507_v57 = vunpack.i.l.bf16 %v1506_v48 }
 0x149   :  { %v256_v47 = vsel %vm255_vm5, 0.0, %v1492_v44  ;;  %v257_v49 = vsel %vm255_vm5, %v1657_v18, %v1493_v43 }
 0x14a   :  { %v1496_v50 = vpop.permute.xlu0 %1495  ;;  %v261_v51 = vsel %vm260_vm6, %v256_v47, %v1502_v46  ;;  %v262_v52 = vsel %vm260_vm6, %v257_v49, %v1503_v45 }
 0x14b   :  { %v1498_v53 = vunpack.i.h.bf16 %v1496_v50  ;;  %v1497_v54 = vunpack.i.l.bf16 %v1496_v50  ;;  %v265_v55 = vpack.c.bf16 %v262_v52, %v261_v51 }
 0x14d   :  { %v259_v58 = vsel %vm255_vm5, %v1662_v21, %v1498_v53  ;;  %v258_v59 = vsel %vm255_vm5, 0.0, %v1497_v54  ;;  %1417 = vmatprep.mubr.msk.bf16.mxu1 %vm324_vm7, %v265_v55 }
 0x14e   :  { %v264_v60 = vsel %vm260_vm6, %v259_v58, %v1508_v56  ;;  %v263_v61 = vsel %vm260_vm6, %v258_v59, %v1507_v57 }
 0x14f   :  { %v266_v62 = vpack.c.bf16 %v264_v60, %v263_v61 }
 0x151   :  { %1418 = vmatmul.mubr.msk.bf16.vlgmr.msra.gmra.mxu1 %vm324_vm7, %v266_v62 }
 0x211   :  { %v1419_v7 = vpop.f32.mrf.mxu1 }
 0x212   :  { %v374_v15 = vadd.f32 %v1419_v7, %v287_v9 }
 0x213   :  { %v365_v10 = vpop.f32.mrf.mxu1 }
 0x214   :  { %v366_v13 = vadd.f32 %v365_v10, %v287_v9  ;;  %v382_v26 = vmax.f32 %v374_v15, 0.0 }
 0x215   :  { %v1420_v12 = vpop.f32.mrf.mxu1 }
 0x216   :  { %v377_v14 = vadd.f32 %v1420_v12, %v287_v9  ;;  %v380_v23 = vmax.f32 %v366_v13, 0.0 }
 0x217   :  { %v368_v16 = vpop.f32.mrf.mxu1 }
 0x218   :  { %v369_v17 = vadd.f32 %v368_v16, %v287_v9  ;;  %v383_v20 = vmax.f32 %v377_v14, 0.0 }
 0x21a   :  { %v381_v24 = vmax.f32 %v369_v17, 0.0  ;;  %v385_v29 = vpack.c.bf16 %v383_v20, %v382_v26  ;;  %v1768_v26 = vsub.s32 3, %v1641_v8 }
 0x21c   :  { %v384_v28 = vpack.c.bf16 %v381_v24, %v380_v23  ;;  %v1765_v24 = vsub.s32 2, %v1641_v8 }
 0x21e   :  { %1425 = vmatprep.mubr.msk.bf16.mxu0 %vm255_vm5, %v384_v28 }
 0x21f   :  { %1426 = vmatmul.mubr.msk.bf16.vlgmr.msra.gmra.mxu0 %vm255_vm5, %v385_v29 }
 0x220   :  { %1430 = vmatpush3.bf16.msra.mxu0 %v1561_v30 }
 0x221   :  { %1431 = vmatprep.subr.bf16.mxu0 %v1562_v31 }
 0x224   :  { %1432 = vmatpush3.bf16.msra.mxu0 %v1562_v31  ;;  %v507_v31 = vrot.slane %v1733_v6, %v1768_v26 }
 0x225   :  { %1433 = vmatprep.subr.bf16.mxu0 %v1563_v32 }
 0x228   :  { %1434 = vmatpush3.bf16.msra.mxu0 %v1563_v32  ;;  %v1774_v32 = vpop.permute.xlu1 %45 }
 0x229   :  { %1435 = vmatprep.subr.bf16.mxu0 %v1564_v33 }
 0x22c   :  { %1436 = vmatpush3.bf16.msra.mxu0 %v1564_v33  ;;  %v1776_v33 = vpop.permute.xlu0 %30 }
 0x2df   :  { %v1427_v35 = vpop.f32.mrf.mxu0 }
 0x2e0   :  { %v451_v41 = vadd.f32 %v1427_v35, %v389_v37 }
 0x2e1   :  { %v442_v36 = vpop.f32.mrf.mxu0 }
 0x2e2   :  { %v443_v39 = vadd.f32 %v442_v36, %v389_v37  ;;  %v460_v47 = vsel %vm255_vm5, %v451_v41, 0.0 }
 0x2e3   :  { %v1428_v38 = vpop.f32.mrf.mxu0 }
 0x2e4   :  { %v457_v43 = vsel %vm255_vm5, %v443_v39, 0.0  ;;  %v454_v44 = vadd.f32 %v1428_v38, %v389_v37 }
 0x2e5   :  { %v445_v40 = vpop.f32.mrf.mxu0 }
 0x2e6   :  { %v446_v42 = vadd.f32 %v445_v40, %v389_v37  ;;  %v462_v49 = vsel %vm255_vm5, %v454_v44, 0.0 }
 0x2e8   :  { %v458_v45 = vsel %vm255_vm5, %v446_v42, 0.0 }
 0x2e9   :  { %v459_v46 = vadd.f32 %v458_v45, %v457_v43 }
 0x2eb   :  { %v461_v48 = vadd.f32 %v460_v47, %v459_v46  ;;  %v1565_v46 = vld [vmem:[%s2028_s3 + $0x48] sm:$0xff]   ;;  %v1785_v47 = vpop.permute.xlu1 %35 }
 0x2ec   :  { %1437 = vmatprep.subr.bf16.mxu0 %v1565_v46 }
 0x2ed   :  { %v463_v50 = vadd.f32 %v462_v49, %v461_v48  ;;  %v1787_v48 = vpop.permute.xlu0 %40  ;;  %1438 = vmatpush3.bf16.msra.mxu0 %v1565_v46  ;;  %v1568_v46 = vld [vmem:[%s2028_s3 + $0x70] sm:$0xff]  }
 0x2ef   :  { %v464_v51 = vrot.slane %v463_v50, 4 }
 0x2f1   :  { %v465_v52 = vadd.f32 %v464_v51, %v463_v50 }
 0x2f3   :  { %v466_v53 = vrot.slane %v465_v52, 2 }
 0x2f5   :  { %v467_v54 = vadd.f32 %v466_v53, %v465_v52  ;;  %v1566_v52 = vld [vmem:[%s2028_s3 + $0x40] sm:$0xff]  }
 0x2f6   :  { %1439 = vmatprep.subr.bf16.mxu0 %v1566_v52 }
 0x2f7   :  { %v468_v55 = vrot.slane %v467_v54, 1  ;;  %1440 = vmatpush3.bf16.msra.mxu0 %v1566_v52 }
 0x2f9   :  { %v469_v56 = vadd.f32 %v468_v55, %v467_v54 }
 0x2fb   :  { %v470_v57 = vmul.f32 0.03125, %v469_v56 }
 0x2fd   :  { %v471_v58 = vsub.f32 %v443_v39, %v470_v57  ;;  %v472_v59 = vsub.f32 %v446_v42, %v470_v57  ;;  %v473_v60 = vsub.f32 %v451_v41, %v470_v57  ;;  %v474_v61 = vsub.f32 %v454_v44, %v470_v57 }
 0x2ff   :  { %v475_v62 = vmul.f32 %v471_v58, %v471_v58  ;;  %v476_v63 = vmul.f32 %v472_v59, %v472_v59  ;;  %v477_v0 = vmul.f32 %v473_v60, %v473_v60  ;;  %v478_v1 = vmul.f32 %v474_v61, %v474_v61 }
 0x301   :  { %v479_v2 = vsel %vm255_vm5, %v475_v62, 0.0  ;;  %v480_v3 = vsel %vm255_vm5, %v476_v63, 0.0  ;;  %v482_v5 = vsel %vm255_vm5, %v477_v0, 0.0  ;;  %v484_v9 = vsel %vm255_vm5, %v478_v1, 0.0 }
 0x302   :  { %v481_v4 = vadd.f32 %v480_v3, %v479_v2 }
 0x304   :  { %v483_v7 = vadd.f32 %v482_v5, %v481_v4 }
 0x306   :  { %v485_v10 = vadd.f32 %v484_v9, %v483_v7 }
 0x308   :  { %v486_v12 = vrot.slane %v485_v10, 4 }
 0x30a   :  { %v487_v13 = vadd.f32 %v486_v12, %v485_v10 }
 0x30c   :  { %v488_v14 = vrot.slane %v487_v13, 2 }
 0x30e   :  { %v489_v15 = vadd.f32 %v488_v14, %v487_v13 }
 0x310   :  { %v490_v16 = vrot.slane %v489_v15, 1 }
 0x312   :  { %v491_v17 = vadd.f32 %v490_v16, %v489_v15 }
 0x314   :  { %v492_v20 = vmul.f32 0.03125, %v491_v17 }
 0x316   :  { %v493_v23 = vadd.f32 1e-05, %v492_v20 }
 0x318   :  { %1579 = vrsqrt.f32 %v493_v23 }
 0x325   :  { %v1580_v28 = vpop.eup %1579 }
 0x326   :  { %v495_v29 = vmul.f32 %v1580_v28, %v1733_v6 }
 0x328   :  { %v499_v30 = vrot.slane %v495_v29, %v1765_v24 }
 0x32a   :  { %v501_v35 = vmul.f32 %v499_v30, %v472_v59  ;;  %v503_v36 = vmul.f32 %v499_v30, %v474_v61  ;;  %v500_v37 = vmul.f32 %v499_v30, %v471_v58  ;;  %v502_v38 = vmul.f32 %v499_v30, %v473_v60 }
 0x32c   :  { %v509_v39 = vadd.f32 %v507_v31, %v501_v35  ;;  %v511_v40 = vadd.f32 %v507_v31, %v503_v36  ;;  %v508_v41 = vadd.f32 %v507_v31, %v500_v37  ;;  %v510_v42 = vadd.f32 %v507_v31, %v502_v38 }
 0x32e   :  { %v515_v43 = vadd.f32 %v511_v40, %v1664_v22  ;;  %v512_v44 = vadd.f32 %v508_v41, %v1657_v18  ;;  %v513_v45 = vadd.f32 %v509_v39, %v1673_v27  ;;  %v514_v6 = vadd.f32 %v510_v42, %v1662_v21 }
 0x330   :  { %v1790_v49 = vmul.f32 %v515_v43, %v1774_v32  ;;  %v1793_v50 = vmul.f32 %v512_v44, %v1776_v33  ;;  %v1796_v18 = vmul.f32 %v513_v45, %v1785_v47  ;;  %v1799_v22 = vmul.f32 %v514_v6, %v1787_v48  ;;  %v1567_v6 = vld [vmem:[%s2028_s3 + $0x78] sm:$0xff]  }
 0x331   :  { %1445 = vmatprep.subr.bf16.mxu1 %v1567_v6 }
 0x332   :  { %v537_v21 = vrot.slane %v1796_v18, 6  ;;  %v538_v27 = vrot.slane %v1799_v22, 6  ;;  %v539_v51 = vrot.slane %v1790_v49, 6  ;;  %v536_v53 = vrot.slane %v1793_v50, 6  ;;  %1446 = vmatpush3.bf16.msra.mxu1 %v1567_v6 }
 0x333   :  { %v1526_v62 = vpack.i.bf16 %v1790_v49, %v1799_v22  ;;  %v1516_v63 = vpack.i.bf16 %v1796_v18, %v1793_v50  ;;  %v521_v0 = vrot.slane %v1796_v18, 4  ;;  %v522_v1 = vrot.slane %v1799_v22, 4  ;;  %1447 = vmatprep.subr.bf16.mxu1 %v1568_v46 }
 0x334   :  { %v541_v54 = vsel %vm540_vm8, %v538_v27, %v539_v51  ;;  %v542_v55 = vsel %vm540_vm8, %v537_v21, %v538_v27  ;;  %v543_v57 = vsel %vm540_vm8, %v536_v53, %v537_v21  ;;  %v544_v58 = vsel %vm540_vm8, %v539_v51, %v536_v53  ;;  %v1866_v21 = vld [vmem:[%s2030_s4 + $0x4] sm:$0xf] }
 0x335   :  { %v555_v56 = vsel %vm534_vm9, 0.0, %v542_v55  ;;  %v553_v60 = vsel %vm532_vm10, 0.0, %v544_v58  ;;  %v523_v2 = vrot.slane %v1790_v49, 4  ;;  %v520_v3 = vrot.slane %v1793_v50, 4 }
 0x336   :  { %v1521_v59 = vpack.i.bf16 %v541_v54, %v555_v56  ;;  %v1511_v61 = vpack.i.bf16 %v543_v57, %v553_v60  ;;  %v525_v5 = vsel %vm206_vm2, %v521_v0, %v522_v1  ;;  %1448 = vmatpush3.bf16.msra.mxu1 %v1568_v46  ;;  %v621_v51 = vrot.slane %v1866_v21, %v1647_v11 }
 0x337   :  { %v527_v12 = vsel %vm206_vm2, %v523_v2, %v520_v3  ;;  %v524_v15 = vsel %vm206_vm2, %v522_v1, %v523_v2  ;;  %v530_v16 = vsel %vm200_vm4, 0.0, %v525_v5  ;;  %v526_v20 = vsel %vm206_vm2, %v520_v3, %v521_v0  ;;  %v1569_v1 = vld [vmem:[%s2028_s3 + $0xa8] sm:$0xff]   ;;  %v1570_v2 = vld [vmem:[%s2028_s3 + $0xa0] sm:$0xff]   ;;  %v1571_v3 = vld [vmem:[%s2028_s3 + $0x98] sm:$0xff]  }
 0x338   :  { %1522 = vrot.lane.b32.xlu0 %v1521_v59, %s1586_s16  ;;  %1512 = vrot.lane.b32.xlu1 %v1511_v61, %s1586_s16  ;;  %v528_v23 = vsel %vm198_vm3, 0.0, %v527_v12 }
 0x339   :  { %1453 = vmatprep.subr.bf16.mxu1 %v1569_v1 }
 0x33c   :  { %1527 = vrot.lane.b32.xlu0 %v1526_v62, %s1585_s15  ;;  %1517 = vrot.lane.b32.xlu1 %v1516_v63, %s1585_s15 }
 0x3aa   :  { %v1523_v4 = vpop.permute.xlu0 %1522  ;;  %v1513_v7 = vpop.permute.xlu1 %1512 }
 0x3ab   :  { %v1525_v9 = vunpack.i.h.bf16 %v1523_v4  ;;  %v1524_v10 = vunpack.i.l.bf16 %v1523_v4  ;;  %v1515_v13 = vunpack.i.h.bf16 %v1513_v7  ;;  %v1514_v14 = vunpack.i.l.bf16 %v1513_v7  ;;  %v1572_v4 = vld [vmem:[%s2028_s3 + $0x90] sm:$0xff]  }
 0x3ad   :  { %v592_v31 = vsel %vm255_vm5, %v524_v15, %v1525_v9  ;;  %v591_v35 = vsel %vm255_vm5, %v530_v16, %v1524_v10  ;;  %v589_v38 = vsel %vm255_vm5, %v528_v23, %v1514_v14  ;;  %v590_v39 = vsel %vm255_vm5, %v526_v20, %v1515_v13 }
 0x3ae   :  { %v1528_v17 = vpop.permute.xlu0 %1527  ;;  %v1518_v30 = vpop.permute.xlu1 %1517  ;;  %v722_v9 = vrot.slane %v1866_v21, %v1752_v34 }
 0x3af   :  { %v1530_v28 = vunpack.i.h.bf16 %v1528_v17  ;;  %v1529_v29 = vunpack.i.l.bf16 %v1528_v17  ;;  %v1520_v36 = vunpack.i.h.bf16 %v1518_v30  ;;  %v1519_v37 = vunpack.i.l.bf16 %v1518_v30 }
 0x3b1   :  { %v595_v40 = vsel %vm260_vm6, %v591_v35, %v1529_v29  ;;  %v596_v41 = vsel %vm260_vm6, %v592_v31, %v1530_v28  ;;  %v593_v43 = vsel %vm260_vm6, %v589_v38, %v1519_v37  ;;  %v594_v44 = vsel %vm260_vm6, %v590_v39, %v1520_v36 }
 0x3b2   :  { %v598_v42 = vpack.c.bf16 %v596_v41, %v595_v40  ;;  %v597_v45 = vpack.c.bf16 %v594_v44, %v593_v43 }
 0x3b4   :  { %1441 = vmatprep.mubr.msk.bf16.mxu0 %vm324_vm7, %v597_v45 }
 0x3b5   :  { %1442 = vmatmul.mubr.msk.bf16.vlgmr.msra.gmra.mxu0 %vm324_vm7, %v598_v42 }
 0x475   :  { %v1443_v27 = vpop.f32.mrf.mxu0 }
 0x476   :  { %v707_v56 = vadd.f32 %v1443_v27, %v621_v51 }
 0x477   :  { %v698_v52 = vpop.f32.mrf.mxu0 }
 0x478   :  { %v699_v54 = vadd.f32 %v698_v52, %v621_v51  ;;  %v715_v62 = vmax.f32 %v707_v56, 0.0 }
 0x479   :  { %v1444_v53 = vpop.f32.mrf.mxu0 }
 0x47a   :  { %v710_v55 = vadd.f32 %v1444_v53, %v621_v51  ;;  %v713_v60 = vmax.f32 %v699_v54, 0.0 }
 0x47b   :  { %v701_v57 = vpop.f32.mrf.mxu0 }
 0x47c   :  { %v702_v58 = vadd.f32 %v701_v57, %v621_v51  ;;  %v716_v59 = vmax.f32 %v710_v55, 0.0 }
 0x47e   :  { %v714_v61 = vmax.f32 %v702_v58, 0.0  ;;  %v718_v0 = vpack.c.bf16 %v716_v59, %v715_v62 }
 0x480   :  { %v717_v63 = vpack.c.bf16 %v714_v61, %v713_v60 }
 0x482   :  { %1449 = vmatprep.mubr.msk.bf16.mxu1 %vm255_vm5, %v717_v63 }
 0x483   :  { %1450 = vmatmul.mubr.msk.bf16.vlgmr.msra.gmra.mxu1 %vm255_vm5, %v718_v0 }
 0x484   :  { %1454 = vmatpush3.bf16.msra.mxu1 %v1569_v1 }
 0x485   :  { %1455 = vmatprep.subr.bf16.mxu1 %v1570_v2 }
 0x488   :  { %1456 = vmatpush3.bf16.msra.mxu1 %v1570_v2 }
 0x489   :  { %1457 = vmatprep.subr.bf16.mxu1 %v1571_v3 }
 0x48c   :  { %1458 = vmatpush3.bf16.msra.mxu1 %v1571_v3 }
 0x48d   :  { %1459 = vmatprep.subr.bf16.mxu1 %v1572_v4 }
 0x490   :  { %1460 = vmatpush3.bf16.msra.mxu1 %v1572_v4 }
 0x543   :  { %v1451_v5 = vpop.f32.mrf.mxu1 }
 0x544   :  { %v784_v14 = vadd.f32 %v1451_v5, %v722_v9 }
 0x545   :  { %v775_v7 = vpop.f32.mrf.mxu1 }
 0x546   :  { %v776_v12 = vadd.f32 %v775_v7, %v722_v9  ;;  %v793_v28 = vsel %vm255_vm5, %v784_v14, 0.0  ;;  %v840_v7 = vrot.slane %v1866_v21, %v1768_v26 }
 0x547   :  { %v1452_v10 = vpop.f32.mrf.mxu1 }
 0x548   :  { %v790_v16 = vsel %vm255_vm5, %v776_v12, 0.0  ;;  %v787_v17 = vadd.f32 %v1452_v10, %v722_v9 }
 0x549   :  { %v778_v13 = vpop.f32.mrf.mxu1 }
 0x54a   :  { %v779_v15 = vadd.f32 %v778_v13, %v722_v9  ;;  %v795_v30 = vsel %vm255_vm5, %v787_v17, 0.0 }
 0x54c   :  { %v791_v20 = vsel %vm255_vm5, %v779_v15, 0.0 }
 0x54d   :  { %v792_v23 = vadd.f32 %v791_v20, %v790_v16  ;;  %v1573_v20 = vld [vmem:[%s2028_s3 + $0x88] sm:$0xff]  }
 0x54e   :  { %1461 = vmatprep.subr.bf16.mxu1 %v1573_v20 }
 0x54f   :  { %v794_v29 = vadd.f32 %v793_v28, %v792_v23  ;;  %1462 = vmatpush3.bf16.msra.mxu1 %v1573_v20  ;;  %v1575_v20 = vld [vmem:[%s2028_s3 + $0xb8] sm:$0xff]  }
 0x550   :  { %1469 = vmatprep.subr.bf16.mxu0 %v1575_v20 }
 0x551   :  { %v796_v31 = vadd.f32 %v795_v30, %v794_v29  ;;  %1470 = vmatpush3.bf16.msra.mxu0 %v1575_v20 }
 0x553   :  { %v797_v35 = vrot.slane %v796_v31, 4 }
 0x555   :  { %v798_v36 = vadd.f32 %v797_v35, %v796_v31 }
 0x557   :  { %v799_v37 = vrot.slane %v798_v36, 2 }
 0x559   :  { %v800_v38 = vadd.f32 %v799_v37, %v798_v36  ;;  %v1574_v37 = vld [vmem:[%s2028_s3 + $0x80] sm:$0xff]  }
 0x55a   :  { %1463 = vmatprep.subr.bf16.mxu1 %v1574_v37 }
 0x55b   :  { %v801_v39 = vrot.slane %v800_v38, 1  ;;  %1464 = vmatpush3.bf16.msra.mxu1 %v1574_v37 }
 0x55d   :  { %v802_v40 = vadd.f32 %v801_v39, %v800_v38 }
 0x55f   :  { %v803_v41 = vmul.f32 0.03125, %v802_v40 }
 0x561   :  { %v804_v42 = vsub.f32 %v776_v12, %v803_v41  ;;  %v805_v43 = vsub.f32 %v779_v15, %v803_v41  ;;  %v806_v44 = vsub.f32 %v784_v14, %v803_v41  ;;  %v807_v45 = vsub.f32 %v787_v17, %v803_v41 }
 0x563   :  { %v808_v6 = vmul.f32 %v804_v42, %v804_v42  ;;  %v809_v46 = vmul.f32 %v805_v43, %v805_v43  ;;  %v810_v27 = vmul.f32 %v806_v44, %v806_v44  ;;  %v811_v51 = vmul.f32 %v807_v45, %v807_v45 }
 0x565   :  { %v812_v52 = vsel %vm255_vm5, %v808_v6, 0.0  ;;  %v813_v53 = vsel %vm255_vm5, %v809_v46, 0.0  ;;  %v815_v55 = vsel %vm255_vm5, %v810_v27, 0.0  ;;  %v817_v57 = vsel %vm255_vm5, %v811_v51, 0.0 }
 0x566   :  { %v814_v54 = vadd.f32 %v813_v53, %v812_v52 }
 0x568   :  { %v816_v56 = vadd.f32 %v815_v55, %v814_v54 }
 0x56a   :  { %v818_v58 = vadd.f32 %v817_v57, %v816_v56 }
 0x56c   :  { %v819_v59 = vrot.slane %v818_v58, 4 }
 0x56e   :  { %v820_v60 = vadd.f32 %v819_v59, %v818_v58 }
 0x570   :  { %v821_v61 = vrot.slane %v820_v60, 2 }
 0x572   :  { %v822_v62 = vadd.f32 %v821_v61, %v820_v60 }
 0x574   :  { %v823_v63 = vrot.slane %v822_v62, 1 }
 0x576   :  { %v824_v0 = vadd.f32 %v823_v63, %v822_v62 }
 0x578   :  { %v825_v1 = vmul.f32 0.03125, %v824_v0 }
 0x57a   :  { %v826_v2 = vadd.f32 1e-05, %v825_v1 }
 0x57c   :  { %1581 = vrsqrt.f32 %v826_v2 }
 0x589   :  { %v1582_v3 = vpop.eup %1581 }
 0x58a   :  { %v828_v4 = vmul.f32 %v1582_v3, %v1866_v21 }
 0x58c   :  { %v832_v5 = vrot.slane %v828_v4, %v1765_v24 }
 0x58e   :  { %v833_v9 = vmul.f32 %v832_v5, %v804_v42  ;;  %v834_v10 = vmul.f32 %v832_v5, %v805_v43  ;;  %v835_v12 = vmul.f32 %v832_v5, %v806_v44  ;;  %v836_v13 = vmul.f32 %v832_v5, %v807_v45 }
 0x590   :  { %v841_v14 = vadd.f32 %v840_v7, %v833_v9  ;;  %v842_v15 = vadd.f32 %v840_v7, %v834_v10  ;;  %v843_v16 = vadd.f32 %v840_v7, %v835_v12  ;;  %v844_v17 = vadd.f32 %v840_v7, %v836_v13 }
 0x592   :  { %v845_v23 = vadd.f32 %v841_v14, %v1793_v50  ;;  %v846_v28 = vadd.f32 %v842_v15, %v1796_v18  ;;  %v847_v29 = vadd.f32 %v843_v16, %v1799_v22  ;;  %v848_v21 = vadd.f32 %v844_v17, %v1790_v49 }
 0x594   :  { %v1906_v30 = vmul.f32 %v846_v28, %v1785_v47  ;;  %v1909_v31 = vmul.f32 %v847_v29, %v1787_v48  ;;  %v1912_v35 = vmul.f32 %v848_v21, %v1774_v32  ;;  %v1915_v36 = vmul.f32 %v845_v23, %v1776_v33  ;;  %v1576_v23 = vld [vmem:[%s2028_s3 + $0xb0] sm:$0xff]   ;;  %v1970_v28 = vld [vmem:[%s2030_s4 + $0x8] sm:$0xf] }
 0x595   :  { %1471 = vmatprep.subr.bf16.mxu0 %v1576_v23  ;;  %v954_v21 = vrot.slane %v1970_v28, %v1647_v11 }
 0x596   :  { %v870_v49 = vrot.slane %v1906_v30, 7  ;;  %v871_v50 = vrot.slane %v1909_v31, 7  ;;  %v872_v18 = vrot.slane %v1912_v35, 7  ;;  %v869_v22 = vrot.slane %v1915_v36, 7  ;;  %1472 = vmatpush3.bf16.msra.mxu0 %v1576_v23 }
 0x597   :  { %v1546_v6 = vpack.i.bf16 %v1912_v35, %v1909_v31  ;;  %v1541_v46 = vpack.i.bf16 %v1906_v30, %v1915_v36  ;;  %v855_v27 = vrot.slane %v1909_v31, 6  ;;  %v856_v51 = vrot.slane %v1912_v35, 6 }
 0x598   :  { %v874_v38 = vsel %vm873_vm12, %v871_v50, %v872_v18  ;;  %v875_v39 = vsel %vm873_vm12, %v870_v49, %v871_v50  ;;  %v876_v40 = vsel %vm873_vm12, %v869_v22, %v870_v49  ;;  %v877_v41 = vsel %vm873_vm12, %v872_v18, %v869_v22 }
 0x599   :  { %v888_v42 = vsel %vm867_vm11, 0.0, %v875_v39  ;;  %v886_v43 = vsel %vm865_vm13, 0.0, %v877_v41  ;;  %v854_v52 = vrot.slane %v1906_v30, 6  ;;  %v853_v53 = vrot.slane %v1915_v36, 6 }
 0x59a   :  { %v1536_v44 = vpack.i.bf16 %v874_v38, %v888_v42  ;;  %v1531_v45 = vpack.i.bf16 %v876_v40, %v886_v43  ;;  %v857_v62 = vsel %vm540_vm8, %v855_v27, %v856_v51 }
 0x59b   :  { %v858_v56 = vsel %vm540_vm8, %v854_v52, %v855_v27  ;;  %v860_v57 = vsel %vm540_vm8, %v856_v51, %v853_v53  ;;  %v859_v0 = vsel %vm540_vm8, %v853_v53, %v854_v52  ;;  %v1055_v52 = vrot.slane %v1970_v28, %v1752_v34 }
 0x59c   :  { %1537 = vrot.lane.b32.xlu0 %v1536_v44, %s1586_s16  ;;  %1532 = vrot.lane.b32.xlu1 %v1531_v45, %s1586_s16  ;;  %v863_v63 = vsel %vm534_vm9, 0.0, %v858_v56  ;;  %v861_v1 = vsel %vm532_vm10, 0.0, %v860_v57 }
 0x5a0   :  { %1547 = vrot.lane.b32.xlu0 %v1546_v6, %s1585_s15  ;;  %1542 = vrot.lane.b32.xlu1 %v1541_v46, %s1585_s15  ;;  %v1577_v6 = vld [vmem:[%s2031_s5 + $0x8] sm:$0xff]   ;;  %v1578_v46 = vld [vmem:[%s2031_s5] sm:$0xff]  }
 0x5a1   :  { %1477 = vmatprep.subr.bf16.mxu0 %v1577_v6 }
 0x60e   :  { %v1538_v54 = vpop.permute.xlu0 %1537  ;;  %v1533_v55 = vpop.permute.xlu1 %1532 }
 0x60f   :  { %v1540_v58 = vunpack.i.h.bf16 %v1538_v54  ;;  %v1539_v59 = vunpack.i.l.bf16 %v1538_v54  ;;  %v1535_v60 = vunpack.i.h.bf16 %v1533_v55  ;;  %v1534_v61 = vunpack.i.l.bf16 %v1533_v55 }
 0x611   :  { %v925_v10 = vsel %vm255_vm5, %v857_v62, %v1540_v58  ;;  %v924_v12 = vsel %vm255_vm5, %v863_v63, %v1539_v59  ;;  %v922_v13 = vsel %vm255_vm5, %v861_v1, %v1534_v61  ;;  %v923_v25 = vsel %vm255_vm5, %v859_v0, %v1535_v60 }
 0x612   :  { %v1548_v2 = vpop.permute.xlu0 %1547  ;;  %v1543_v3 = vpop.permute.xlu1 %1542 }
 0x613   :  { %v1550_v4 = vunpack.i.h.bf16 %v1548_v2  ;;  %v1549_v5 = vunpack.i.l.bf16 %v1548_v2  ;;  %v1545_v7 = vunpack.i.h.bf16 %v1543_v3  ;;  %v1544_v9 = vunpack.i.l.bf16 %v1543_v3 }
 0x615   :  { %v928_v8 = vsel %vm260_vm6, %v924_v12, %v1549_v5  ;;  %v929_v14 = vsel %vm260_vm6, %v925_v10, %v1550_v4  ;;  %v926_v19 = vsel %vm260_vm6, %v922_v13, %v1544_v9  ;;  %v927_v15 = vsel %vm260_vm6, %v923_v25, %v1545_v7 }
 0x616   :  { %v931_v16 = vpack.c.bf16 %v929_v14, %v928_v8  ;;  %v930_v17 = vpack.c.bf16 %v927_v15, %v926_v19 }
 0x618   :  { %1465 = vmatprep.mubr.msk.bf16.mxu1 %vm324_vm7, %v930_v17 }
 0x619   :  { %1466 = vmatmul.mubr.msk.bf16.vlgmr.msra.gmra.mxu1 %vm324_vm7, %v931_v16 }
 0x6d9   :  { %v1467_v29 = vpop.f32.mrf.mxu1 }
 0x6da   :  { %v1040_v37 = vadd.f32 %v1467_v29, %v954_v21 }
 0x6db   :  { %v1031_v49 = vpop.f32.mrf.mxu1 }
 0x6dc   :  { %v1032_v18 = vadd.f32 %v1031_v49, %v954_v21  ;;  %v1048_v43 = vmax.f32 %v1040_v37, 0.0 }
 0x6dd   :  { %v1468_v50 = vpop.f32.mrf.mxu1 }
 0x6de   :  { %v1043_v22 = vadd.f32 %v1468_v50, %v954_v21  ;;  %v1046_v41 = vmax.f32 %v1032_v18, 0.0 }
 0x6df   :  { %v1034_v38 = vpop.f32.mrf.mxu1 }
 0x6e0   :  { %v1035_v39 = vadd.f32 %v1034_v38, %v954_v21  ;;  %v1049_v40 = vmax.f32 %v1043_v22, 0.0 }
 0x6e2   :  { %v1047_v42 = vmax.f32 %v1035_v39, 0.0  ;;  %v1051_v45 = vpack.c.bf16 %v1049_v40, %v1048_v43 }
 0x6e4   :  { %v1050_v44 = vpack.c.bf16 %v1047_v42, %v1046_v41 }
 0x6e6   :  { %1473 = vmatprep.mubr.msk.bf16.mxu0 %vm255_vm5, %v1050_v44 }
 0x6e7   :  { %1474 = vmatmul.mubr.msk.bf16.vlgmr.msra.gmra.mxu0 %vm255_vm5, %v1051_v45  ;;  %v1173_v45 = vrot.slane %v1970_v28, %v1768_v26 }
 0x6e8   :  { %1478 = vmatpush3.bf16.msra.mxu0 %v1577_v6 }
 0x6e9   :  { %1479 = vmatprep.subr.bf16.mxu0 %v1578_v46 }
 0x6ec   :  { %1480 = vmatpush3.bf16.msra.mxu0 %v1578_v46 }
 0x7a7   :  { %v1475_v27 = vpop.f32.mrf.mxu0 }
 0x7a8   :  { %v1117_v56 = vadd.f32 %v1475_v27, %v1055_v52 }
 0x7a9   :  { %v1108_v51 = vpop.f32.mrf.mxu0 }
 0x7aa   :  { %v1109_v54 = vadd.f32 %v1108_v51, %v1055_v52  ;;  %v1126_v62 = vsel %vm255_vm5, %v1117_v56, 0.0 }
 0x7ab   :  { %v1476_v53 = vpop.f32.mrf.mxu0 }
 0x7ac   :  { %v1123_v58 = vsel %vm255_vm5, %v1109_v54, 0.0  ;;  %v1120_v59 = vadd.f32 %v1476_v53, %v1055_v52 }
 0x7ad   :  { %v1111_v55 = vpop.f32.mrf.mxu0 }
 0x7ae   :  { %v1112_v57 = vadd.f32 %v1111_v55, %v1055_v52  ;;  %v1128_v0 = vsel %vm255_vm5, %v1120_v59, 0.0 }
 0x7b0   :  { %v1124_v60 = vsel %vm255_vm5, %v1112_v57, 0.0 }
 0x7b1   :  { %v1125_v61 = vadd.f32 %v1124_v60, %v1123_v58 }
 0x7b3   :  { %v1127_v63 = vadd.f32 %v1126_v62, %v1125_v61 }
 0x7b5   :  { %v1129_v1 = vadd.f32 %v1128_v0, %v1127_v63 }
 0x7b7   :  { %v1130_v2 = vrot.slane %v1129_v1, 4 }
 0x7b9   :  { %v1131_v3 = vadd.f32 %v1130_v2, %v1129_v1 }
 0x7bb   :  { %v1132_v34 = vrot.slane %v1131_v3, 2 }
 0x7bd   :  { %v1133_v4 = vadd.f32 %v1132_v34, %v1131_v3 }
 0x7bf   :  { %v1134_v5 = vrot.slane %v1133_v4, 1 }
 0x7c1   :  { %v1135_v7 = vadd.f32 %v1134_v5, %v1133_v4 }
 0x7c3   :  { %v1136_v9 = vmul.f32 0.03125, %v1135_v7 }
 0x7c5   :  { %v1137_v10 = vsub.f32 %v1109_v54, %v1136_v9  ;;  %v1138_v12 = vsub.f32 %v1112_v57, %v1136_v9  ;;  %v1139_v13 = vsub.f32 %v1117_v56, %v1136_v9  ;;  %v1140_v25 = vsub.f32 %v1120_v59, %v1136_v9 }
 0x7c7   :  { %v1141_v8 = vmul.f32 %v1137_v10, %v1137_v10  ;;  %v1142_v14 = vmul.f32 %v1138_v12, %v1138_v12  ;;  %v1143_v19 = vmul.f32 %v1139_v13, %v1139_v13  ;;  %v1144_v15 = vmul.f32 %v1140_v25, %v1140_v25 }
 0x7c9   :  { %v1145_v16 = vsel %vm255_vm5, %v1141_v8, 0.0  ;;  %v1146_v17 = vsel %vm255_vm5, %v1142_v14, 0.0  ;;  %v1148_v23 = vsel %vm255_vm5, %v1143_v19, 0.0  ;;  %v1150_v21 = vsel %vm255_vm5, %v1144_v15, 0.0 }
 0x7ca   :  { %v1147_v20 = vadd.f32 %v1146_v17, %v1145_v16 }
 0x7cc   :  { %v1149_v29 = vadd.f32 %v1148_v23, %v1147_v20 }
 0x7ce   :  { %v1151_v49 = vadd.f32 %v1150_v21, %v1149_v29 }
 0x7d0   :  { %v1152_v50 = vrot.slane %v1151_v49, 4 }
 0x7d2   :  { %v1153_v18 = vadd.f32 %v1152_v50, %v1151_v49 }
 0x7d4   :  { %v1154_v22 = vrot.slane %v1153_v18, 2 }
 0x7d6   :  { %v1155_v37 = vadd.f32 %v1154_v22, %v1153_v18 }
 0x7d8   :  { %v1156_v38 = vrot.slane %v1155_v37, 1 }
 0x7da   :  { %v1157_v39 = vadd.f32 %v1156_v38, %v1155_v37 }
 0x7dc   :  { %v1158_v40 = vmul.f32 0.03125, %v1157_v39 }
 0x7de   :  { %v1159_v41 = vadd.f32 1e-05, %v1158_v40 }
 0x7e0   :  { %1583 = vrsqrt.f32 %v1159_v41 }
 0x7ed   :  { %v1584_v42 = vpop.eup %1583 }
 0x7ee   :  { %v1161_v43 = vmul.f32 %v1584_v42, %v1970_v28 }
 0x7f0   :  { %v1165_v44 = vrot.slane %v1161_v43, %v1765_v24 }
 0x7f2   :  { %v1166_v6 = vmul.f32 %v1165_v44, %v1137_v10  ;;  %v1167_v46 = vmul.f32 %v1165_v44, %v1138_v12  ;;  %v1168_v27 = vmul.f32 %v1165_v44, %v1139_v13  ;;  %v1169_v51 = vmul.f32 %v1165_v44, %v1140_v25 }
 0x7f4   :  { %v1175_v52 = vadd.f32 %v1173_v45, %v1167_v46  ;;  %v1174_v53 = vadd.f32 %v1173_v45, %v1166_v6  ;;  %v1176_v54 = vadd.f32 %v1173_v45, %v1168_v27  ;;  %v1177_v55 = vadd.f32 %v1173_v45, %v1169_v51 }
 0x7f6   :  { %v1179_v56 = vadd.f32 %v1175_v52, %v1906_v30  ;;  %v1178_v57 = vadd.f32 %v1174_v53, %v1915_v36  ;;  %v1180_v58 = vadd.f32 %v1176_v54, %v1909_v31  ;;  %v1181_v59 = vadd.f32 %v1177_v55, %v1912_v35  ;;  %v1192_v30 = vld [vmem:[%s2031_s5 + $0x10] sm:$0x1] }
 0x7f7   :  { %v1193_v31 = vunpack.c.l.bf16 %v1192_v30 }
 0x7f8   :  { %v1182_v24 = vmul.f32 %v1178_v57, %v1776_v33  ;;  %v1183_v26 = vmul.f32 %v1179_v56, %v1785_v47  ;;  %v1184_v28 = vmul.f32 %v1180_v58, %v1787_v48  ;;  %v1185_v60 = vmul.f32 %v1181_v59, %v1774_v32 }
 0x7f9   :  { %v1197_v35 = vrot.slane %v1193_v31, %v1647_v11 }
 0x7fa   :  { %v1186_v61 = vpack.c.bf16 %v1183_v26, %v1182_v24  ;;  %v1187_v62 = vpack.c.bf16 %v1185_v60, %v1184_v28 }
 0x7fc   :  { %1481 = vmatprep.mubr.msk.bf16.mxu0 %vm255_vm5, %v1186_v61 }
 0x7fd   :  { %1482 = vmatmul.mubr.msk.bf16.vlgmr.msra.gmra.mxu0 %vm255_vm5, %v1187_v62 }
 0x8bd   :  { %v1483_v36 = vpop.f32.mrf.mxu0 }
 0x8be   :  { %v1259_v63 = vadd.f32 %v1483_v36, %v1197_v35 }
 0x8bf   :  { %v1250_v0 = vpop.f32.mrf.mxu0 }
 0x8c0   :  { %v1267_v1 = vmul.f32 %v1259_v63, %v1787_v48  ;;  %v1251_v2 = vadd.f32 %v1250_v0, %v1197_v35 }
 0x8c1   :  { %v1484_v3 = vpop.f32.mrf.mxu0 }
 0x8c2   :  { %1272 = vst.msk [vmem:[%s2032_s6 + $0x10] sm:$0xff] %vm1269_vm14, %v1267_v1  ;;  %v1265_v34 = vmul.f32 %v1251_v2, %v1776_v33  ;;  %v1262_v4 = vadd.f32 %v1484_v3, %v1197_v35 }
 0x8c3   :  { %v1253_v5 = vpop.f32.mrf.mxu0 }
 0x8c4   :  { %1270 = vst.msk [vmem:[%s2032_s6] sm:$0xff] %vm1269_vm14, %v1265_v34  ;;  %v1268_v11 = vmul.f32 %v1262_v4, %v1774_v32  ;;  %v1254_v7 = vadd.f32 %v1253_v5, %v1197_v35 }
 0x8c6   :  { %1273 = vst.msk [vmem:[%s2032_s6 + $0x18] sm:$0xff] %vm1269_vm14, %v1268_v11  ;;  %v1266_v48 = vmul.f32 %v1254_v7, %v1785_v47 }
 0x8c8   :  { %1271 = vst.msk [vmem:[%s2032_s6 + $0x8] sm:$0xff] %vm1269_vm14, %v1266_v48 }

</bundles_post_ra>
